<compile_context>
chip_gen: v6e
topology: v6e:2x2x1
jax: 0.10.0
libtpu: 0.0.40
codegen_flags: <defaults>
</compile_context>

<pallas_src>
import functools
import math

import jax
import jax.numpy as jnp
from jax.experimental import pallas as pl
from jax.experimental.pallas import tpu as pltpu


def _round_up(a: int, b: int) -> int:
    return (a + b - 1) // b * b


def _cdiv(a: int, b: int) -> int:
    return (a + b - 1) // b


def _sinusoidal_pos_emb_kernel(x_ref, freq_ref, o_ref, *, dim: int, half_dim: int, r: int):
    # x_ref:    (TR, r) float32 — r consecutive timesteps per output row.
    # freq_ref: (1, W)  float32 — per-lane frequency table, W = r * dim (grid-resident).
    # o_ref:    (TR, W) out dtype.
    xb = x_ref[...]                                                 # (TR, r)
    lane = jax.lax.broadcasted_iota(jnp.int32, o_ref.shape, 1)      # (TR, W)

    # Expand the r timesteps across lanes with r-1 VPU selects (exact, no
    # cross-lane data movement): lanes [j*dim, (j+1)*dim) take column j.
    x_exp = xb[:, 0:1]
    for j in range(1, r):
        x_exp = jnp.where(lane >= j * dim, xb[:, j:j + 1], x_exp)

    arg = x_exp * freq_ref[...]                                     # (TR, W)

    # sin | cos split as a per-lane select (replaces the PyTorch concat).
    # Note: where() evaluates both branches full-width; if transcendental
    # throughput ever binds, a precomputed +pi/2 phase lane would halve it at
    # a small accuracy cost.
    k = lane % dim
    out = jnp.where(k < half_dim, jnp.sin(arg), jnp.cos(arg))
    o_ref[...] = out.astype(o_ref.dtype)


def sinusoidal_pos_emb(x: jax.Array, dim: int, *, block_rows: int = 256,
                       out_dtype=jnp.float32) -> jax.Array:
    """x: (B,) timesteps. Returns (B, dim) sinusoidal embeddings."""
    assert dim % 2 == 0 and dim >= 4, "dim must be even and >= 4 (half_dim-1 > 0)"
    half_dim = dim // 2
    B = x.shape[0]

    # Lane packing: r timesteps per 128-lane output row when dim divides 128.
    r = 128 // dim if 128 % dim == 0 else 1
    W = r * dim

    rows = _cdiv(B, r)
    # Cap rows-per-block so the (double-buffered) output tile stays ~<= 4 MiB.
    max_rows_by_vmem = max(8, ((4 * 1024 * 1024) // (W * 4)) // 8 * 8)
    tr = min(block_rows, max_rows_by_vmem, _round_up(rows, 8))
    rows_pad = _round_up(rows, tr)
    b_pad = rows_pad * r

    x_f = x.astype(jnp.float32)
    if b_pad != B:
        x_f = jnp.pad(x_f, (0, b_pad - B))          # zero pad: sin(0)/cos(0), sliced away
    x_packed = x_f.reshape(rows_pad, r)

    # Frequency table, hoisted out of the kernel (identical formula to torch).
    emb_scale = math.log(10000) / (half_dim - 1)
    freqs = jnp.exp(jnp.arange(half_dim, dtype=jnp.float32) * -emb_scale)    # (half_dim,)
    freq_row = jnp.concatenate([freqs, freqs])                               # (dim,)
    freq_tiled = jnp.tile(freq_row, (r,)).reshape(1, W)                      # (1, W)

    grid = (rows_pad // tr,)
    kernel = functools.partial(_sinusoidal_pos_emb_kernel,
                               dim=dim, half_dim=half_dim, r=r)

    out_packed = pl.pallas_call(
        kernel,
        out_shape=jax.ShapeDtypeStruct((rows_pad, W), out_dtype),
        grid=grid,
        in_specs=[
            pl.BlockSpec((tr, r), lambda i: (i, 0)),   # batch tile
            pl.BlockSpec((1, W), lambda i: (0, 0)),    # freq table, resident across grid
        ],
        out_specs=pl.BlockSpec((tr, W), lambda i: (i, 0)),
        compiler_params=pltpu.CompilerParams(
            dimension_semantics=("parallel",),
        ),
    )(x_packed, freq_tiled)

    out = out_packed.reshape(b_pad, dim)
    if b_pad != B:
        out = out[:B]
    return out


def _reference(x: jax.Array, dim: int) -> jax.Array:
    half_dim = dim // 2
    emb = math.log(10000) / (half_dim - 1)
    emb = jnp.exp(jnp.arange(half_dim, dtype=jnp.float32) * -emb)
    emb = x.astype(jnp.float32)[:, None] * emb[None, :]
    return jnp.concatenate([jnp.sin(emb), jnp.cos(emb)], axis=-1)


if __name__ == "__main__":
    key = jax.random.PRNGKey(0)

    # Main case: SinusoidalPosEmb(dim=32) on a small batch of diffusion steps.
    B, dim = 8, 32
    x = jax.random.uniform(key, (B,), dtype=jnp.float32, minval=0.0, maxval=1000.0)
    out = jax.block_until_ready(sinusoidal_pos_emb(x, dim))
    ref = _reference(x, dim)
    assert out.shape == (B, dim), out.shape
    assert jnp.allclose(out, ref, atol=1e-5, rtol=1e-5), float(jnp.max(jnp.abs(out - ref)))

    # Second case: dim >= 128 (already lane-dense, r=1) with a ragged batch
    # to exercise the padding/slicing path.
    B2, dim2 = 5, 256
    x2 = jax.random.uniform(jax.random.PRNGKey(1), (B2,), dtype=jnp.float32,
                            minval=0.0, maxval=1000.0)
    out2 = jax.block_until_ready(sinusoidal_pos_emb(x2, dim2))
    ref2 = _reference(x2, dim2)
    assert out2.shape == (B2, dim2), out2.shape
    assert jnp.allclose(out2, ref2, atol=1e-5, rtol=1e-5), float(jnp.max(jnp.abs(out2 - ref2)))

    print("KERNEL_OK")
</pallas_src>

<mosaic_0001>
module attributes {stable_mosaic.version = 11 : i64} {
  func.func @_sinusoidal_pos_emb_kernel(%arg0: i32, %arg1: memref<8x4xf32, #tpu.memory_space<vmem>>, %arg2: memref<1x128xf32, #tpu.memory_space<vmem>>, %arg3: memref<8x128xf32, #tpu.memory_space<vmem>>) attributes {dimension_semantics = [#tpu.dimension_semantics<parallel>], iteration_bounds = array<i64: 1>, scalar_prefetch = 0 : i64, scratch_operands = 0 : i64, tpu.core_type = #tpu.core_type<tc>, window_params = [{transform_indices = @transform_0, window_bounds = array<i64: 8, 4>}, {pipeline_mode = #tpu.pipeline_mode<synchronous>, transform_indices = @transform_1, window_bounds = array<i64: 1, 128>}, {transform_indices = @transform_2, window_bounds = array<i64: 8, 128>}]} {
    %c0 = arith.constant 0 : index
    %c0_0 = arith.constant 0 : index
    %0 = vector.load %arg1[%c0, %c0_0] : memref<8x4xf32, #tpu.memory_space<vmem>>, vector<8x4xf32>
    %1 = tpu.iota {dimensions = array<i32: 1>} : vector<8x128xi32>
    %2 = vector.extract_strided_slice %0 {offsets = [0, 0], sizes = [8, 1], strides = [1, 1]} : vector<8x4xf32> to vector<8x1xf32>
    %c32_i32 = arith.constant 32 : i32
    %3 = vector.broadcast %c32_i32 : i32 to vector<8x128xi32>
    %4 = arith.cmpi sge, %1, %3 : vector<8x128xi32>
    %5 = vector.extract_strided_slice %0 {offsets = [0, 1], sizes = [8, 1], strides = [1, 1]} : vector<8x4xf32> to vector<8x1xf32>
    %6 = vector.shape_cast %5 : vector<8x1xf32> to vector<8x1xf32>
    %7 = vector.broadcast %6 : vector<8x1xf32> to vector<8x128xf32>
    %8 = vector.shape_cast %2 : vector<8x1xf32> to vector<8x1xf32>
    %9 = vector.broadcast %8 : vector<8x1xf32> to vector<8x128xf32>
    %10 = arith.select %4, %7, %9 : vector<8x128xi1>, vector<8x128xf32>
    %c64_i32 = arith.constant 64 : i32
    %11 = vector.broadcast %c64_i32 : i32 to vector<8x128xi32>
    %12 = arith.cmpi sge, %1, %11 : vector<8x128xi32>
    %13 = vector.extract_strided_slice %0 {offsets = [0, 2], sizes = [8, 1], strides = [1, 1]} : vector<8x4xf32> to vector<8x1xf32>
    %14 = vector.shape_cast %13 : vector<8x1xf32> to vector<8x1xf32>
    %15 = vector.broadcast %14 : vector<8x1xf32> to vector<8x128xf32>
    %16 = arith.select %12, %15, %10 : vector<8x128xi1>, vector<8x128xf32>
    %c96_i32 = arith.constant 96 : i32
    %17 = vector.broadcast %c96_i32 : i32 to vector<8x128xi32>
    %18 = arith.cmpi sge, %1, %17 : vector<8x128xi32>
    %19 = vector.extract_strided_slice %0 {offsets = [0, 3], sizes = [8, 1], strides = [1, 1]} : vector<8x4xf32> to vector<8x1xf32>
    %20 = vector.shape_cast %19 : vector<8x1xf32> to vector<8x1xf32>
    %21 = vector.broadcast %20 : vector<8x1xf32> to vector<8x128xf32>
    %22 = arith.select %18, %21, %16 : vector<8x128xi1>, vector<8x128xf32>
    %c0_1 = arith.constant 0 : index
    %c0_2 = arith.constant 0 : index
    %23 = vector.load %arg2[%c0_1, %c0_2] : memref<1x128xf32, #tpu.memory_space<vmem>>, vector<1x128xf32>
    %24 = vector.broadcast %23 : vector<1x128xf32> to vector<8x128xf32>
    %25 = arith.mulf %22, %24 : vector<8x128xf32>
    %c32_i32_3 = arith.constant 32 : i32
    %c0_i32 = arith.constant 0 : i32
    %26 = arith.cmpi eq, %c32_i32_3, %c0_i32 : i32
    %c1_i32 = arith.constant 1 : i32
    %27 = arith.select %26, %c1_i32, %c32_i32_3 : i32
    %28 = vector.broadcast %27 : i32 to vector<8x128xi32>
    %29 = arith.remsi %1, %28 : vector<8x128xi32>
    %c0_i32_4 = arith.constant 0 : i32
    %30 = vector.broadcast %c0_i32_4 : i32 to vector<8x128xi32>
    %31 = arith.cmpi ne, %29, %30 : vector<8x128xi32>
    %c0_i32_5 = arith.constant 0 : i32
    %32 = vector.broadcast %c0_i32_5 : i32 to vector<8x128xi32>
    %33 = arith.cmpi slt, %29, %32 : vector<8x128xi32>
    %c0_i32_6 = arith.constant 0 : i32
    %34 = arith.cmpi slt, %27, %c0_i32_6 : i32
    %35 = vector.broadcast %34 : i1 to vector<8x128xi1>
    %36 = vector.broadcast %35 : vector<8x128xi1> to vector<8x128xi1>
    %37 = arith.xori %33, %36 : vector<8x128xi1>
    %38 = arith.andi %37, %31 : vector<8x128xi1>
    %39 = vector.broadcast %27 : i32 to vector<8x128xi32>
    %40 = arith.addi %29, %39 : vector<8x128xi32>
    %41 = arith.select %38, %40, %29 : vector<8x128xi1>, vector<8x128xi32>
    %c16_i32 = arith.constant 16 : i32
    %42 = vector.broadcast %c16_i32 : i32 to vector<8x128xi32>
    %43 = arith.cmpi slt, %41, %42 : vector<8x128xi32>
    %44 = math.sin %25 : vector<8x128xf32>
    %45 = math.cos %25 : vector<8x128xf32>
    %46 = arith.select %43, %44, %45 : vector<8x128xi1>, vector<8x128xf32>
    %c0_7 = arith.constant 0 : index
    %c0_8 = arith.constant 0 : index
    %47 = vector.load %arg3[%c0_7, %c0_8] : memref<8x128xf32, #tpu.memory_space<vmem>>, vector<8x128xf32>
    tpu.vector_store %arg3[%c0_7, %c0_8], %46 {strides = array<i32>} : memref<8x128xf32, #tpu.memory_space<vmem>>, vector<8x128xf32>,
    return
  }
  func.func @transform_0(%arg0: i32) -> (i32, i32) {
    %c0_i32 = arith.constant 0 : i32
    %c0_i32_0 = arith.constant 0 : i32
    return %arg0, %c0_i32 : i32, i32
  }
  func.func @transform_1(%arg0: i32) -> (i32, i32) {
    %c0_i32 = arith.constant 0 : i32
    %c0_i32_0 = arith.constant 0 : i32
    %c0_i32_1 = arith.constant 0 : i32
    return %c0_i32, %c0_i32_0 : i32, i32
  }
  func.func @transform_2(%arg0: i32) -> (i32, i32) {
    %c0_i32 = arith.constant 0 : i32
    %c0_i32_0 = arith.constant 0 : i32
    return %arg0, %c0_i32 : i32, i32
  }
}

</mosaic_0001>

<bundles_post_ra>
// kernel: tpu_custom_call.1
= control target key start
LH: loop header
LB: loop body
LE: loop exit
PB: predicated region body
PF: predicated region fallthrough
CT: control target
= control target key end

     0   :  { %v337_v1 = vmov 1   ;;  %v338_v2 = vmov 2   ;;  %s405_s0 = inlined_call_operand.vmem [shape: f32[8,4], index: 0, kind: input, shape index: {}]   ;;  %s406_s1 = inlined_call_operand.vmem [shape: f32[1,128], index: 1, kind: input, shape index: {}]   ;;  %s407_s2 = inlined_call_operand.hbm [shape: f32[8,128], index: 2, kind: output, shape index: {}]  }
   0x1   :  { %v12_v0 = vld [vmem:[%s405_s0] sm:$0xff]  ;;  %306 = vset.pattern.permute.xlu0 %v337_v1  ;;  %308 = vset.pattern.permute.xlu1 %v338_v2 }
   0x2   :  { %7 = vsyncpa [#allocation3], 0  ;;  %18 = vperm.xlu0 %306, %v12_v0   ;;  %28 = vperm.xlu1 %308, %v12_v0   ;;  %v339_v3 = vmov 0   ;;  %v340_v4 = vmov 3   ;;  %v13_v5 = vlaneseq  ;;  %v282_v12 = vld [vmem:[%s406_s1] ss:$0 sm:$0xff] }
   0x3   :  { %v341_v26 = vmov 683565275   ;;  %v342_v28 = vmov 2475754826   ;;  %v343_v31 = vmov 2131351028  }
   0x4   :  { %v366_v6 = vand.u32 127, %v13_v5  ;;  %v344_v34 = vmov 2102212464   ;;  %v345_v37 = vmov 920167782   ;;  %s347_s1 = smov [#allocation2]  }
   0x5   :  { %v346_v40 = vmov 1326507024   ;;  %s274_s12 = sshll.u32 %s347_s1, 4  ;;  %s275_s12 = int_to_ptr.vmem [resolvable:$true] %s274_s12 }
   0x6   :  { %307 = vset.pattern.permute.xlu0 %v339_v3  ;;  %309 = vset.pattern.permute.xlu1 %v340_v4  ;;  %vm15_vm0 = vcmp.ge.s32.totalorder %v366_v6, 32  ;;  %vm26_vm1 = vcmp.ge.s32.totalorder %v366_v6, 64  ;;  %vm32_vm2 = vcmp.ge.s32.totalorder %v366_v6, 96  ;;  %s315_s13 = scalar_lea.vmem %s275_s12, 128  ;;  %p320_p1 = scmp.lt.s32.totalorder %s275_s12, %s275_s12 }
   0x7   :  { %22 = vperm.xlu0 %307, %v12_v0   ;;  %34 = vperm.xlu1 %309, %v12_v0   ;;  %p316_p0 = scmp.ne.s32.totalorder %s275_s12, %s315_s13  ;;  %p321_p2 = scmp.lt.s32.totalorder %s315_s13, %s315_s13 }
   0x9   :  { %p322_p3 = por %p321_p2, %p320_p1 }
   0xb   :  { %310 = vset.pattern.permute.xlu0 %v340_v4  ;;  %p323_p4 = pnand %p322_p3, %p316_p0 }
  0x7d   :  { %v19_v7 = vpop.permute.xlu0 %18  ;;  %v29_v8 = vpop.permute.xlu1 %28 }
  0x82   :  { %v23_v9 = vpop.permute.xlu0 %22  ;;  %v35_v10 = vpop.permute.xlu1 %34 }
  0x83   :  { %v25_v11 = vsel %vm15_vm0, %v19_v7, %v23_v9 }
  0x84   :  { %v31_v13 = vsel %vm26_vm1, %v29_v8, %v25_v11 }
  0x85   :  { %v37_v14 = vsel %vm32_vm2, %v35_v10, %v31_v13 }
  0x86   :  { %v374_v15 = vmul.f32 %v282_v12, %v37_v14 }
  0x88   :  { %v62_v16 = vand.u32 2139095040, %v374_v15  ;;  %v59_v20 = vand.u32 2147483647, %v374_v15  ;;  %vm61_vm10 = vcmp.lt.s32.totalorder %v374_v15, 0 }
  0x8a   :  { %v63_v17 = vshrl.u32 %v62_v16, 23  ;;  %v66_v23 = vand.u32 8388607, %v59_v20  ;;  %vm60_vm11 = vcmp.le.f32.partialorder %v59_v20, 0.7853982 }
  0x8c   :  { %v283_v18 = vadd.s32 4294967169, %v63_v17  ;;  %v67_v42 = vor.u32 8388608, %v66_v23 }
  0x8e   :  { %v69_v19 = vadd.s32 1, %v283_v18  ;;  %v107_v56 = vshll.u32 %v67_v42, 8 }
  0x90   :  { %vm70_vm3 = vcmp.gt.s32.totalorder %v69_v19, 0 }
  0x91   :  { %v71_v21 = vsel %vm70_vm3, %v69_v19, 0  ;;  %vm151_vm3 = vweird.f32 %v374_v15 }
  0x92   :  { %v73_v22 = vand.u32 31, %v71_v21  ;;  %v72_v25 = vshrl.u32 %v71_v21, 5 }
  0x94   :  { %v74_v24 = vsub.s32 32, %v73_v22  ;;  %v76_v27 = vshll.u32 %v341_v26, %v73_v22  ;;  %v79_v29 = vshll.u32 %v342_v28, %v73_v22  ;;  %v82_v33 = vshll.u32 %v343_v31, %v73_v22 }
  0x95   :  { %v85_v36 = vshll.u32 %v344_v34, %v73_v22  ;;  %v88_v39 = vshll.u32 %v345_v37, %v73_v22  ;;  %vm91_vm4 = vcmp.lt.s32.totalorder %v72_v25, 1  ;;  %vm94_vm5 = vcmp.lt.s32.totalorder %v72_v25, 4 }
  0x96   :  { %v77_v30 = vshrl.u32 %v342_v28, %v74_v24  ;;  %v80_v32 = vshrl.u32 %v343_v31, %v74_v24  ;;  %v83_v35 = vshrl.u32 %v344_v34, %v74_v24  ;;  %v86_v38 = vshrl.u32 %v345_v37, %v74_v24 }
  0x97   :  { %v89_v41 = vshrl.u32 %v346_v40, %v74_v24  ;;  %v75_v51 = vshrl.u32 %v341_v26, %v74_v24  ;;  %vm93_vm6 = vcmp.lt.s32.totalorder %v72_v25, 3  ;;  %vm92_vm7 = vcmp.lt.s32.totalorder %v72_v25, 2 }
  0x98   :  { %v78_v43 = vor.u32 %v77_v30, %v76_v27  ;;  %v81_v44 = vor.u32 %v80_v32, %v79_v29  ;;  %v84_v45 = vor.u32 %v83_v35, %v82_v33  ;;  %v87_v46 = vor.u32 %v86_v38, %v85_v36 }
  0x99   :  { %v90_v47 = vor.u32 %v89_v41, %v88_v39  ;;  %v50_v37 = vand.u32 31, %v366_v6 }
  0x9a   :  { %v96_v48 = vsel %vm94_vm5, %v84_v45, 2102212464  ;;  %v99_v49 = vsel %vm91_vm4, %v78_v43, %v81_v44  ;;  %v103_v50 = vsel %vm91_vm4, %v81_v44, %v84_v45  ;;  %v100_v52 = vsel %vm94_vm5, %v87_v46, 920167782 }
  0x9b   :  { %v104_v53 = vsel %vm94_vm5, %v90_v47, 1326507024  ;;  %v101_v54 = vsel %vm93_vm6, %v84_v45, %v100_v52  ;;  %v95_v57 = vsel %vm91_vm4, %v75_v51, %v78_v43  ;;  %v97_v58 = vsel %vm93_vm6, %v81_v44, %v96_v48 }
  0x9c   :  { %v105_v55 = vsel %vm93_vm6, %v87_v46, %v104_v53  ;;  %v102_v59 = vsel %vm92_vm7, %v99_v49, %v101_v54  ;;  %v98_v1 = vsel %vm92_vm7, %v95_v57, %v97_v58  ;;  %vm395_vm12 = vcmp.lt.s32.totalorder %v50_v37, 16 }
  0x9d   :  { %v106_v60 = vsel %vm92_vm7, %v103_v50, %v105_v55  ;;  %v383_v63 = vmul.u32.u64.low %v107_v56, %v102_v59  ;;  %v384_v0 = vmul.u32.u64.high %v107_v56, %v102_v59, %v383_v63  ;;  %v114_v3 = vmul.u32 %v107_v56, %v98_v1 }
  0x9e   :  { %v380_v61 = vmul.u32.u64.low %v107_v56, %v106_v60  ;;  %v381_v62 = vmul.u32.u64.high %v107_v56, %v106_v60, %v380_v61 }
  0x9f   :  { %v117_v2 = vadd.s32 1, %v384_v0 }
  0xa0   :  { %vm116_vm8 = vc.u32 %v381_v62, %v383_v63  ;;  %v115_v17 = vadd.s32 %v383_v63, %v381_v62 }
  0xa1   :  { %v118_v4 = vsel %vm116_vm8, %v117_v2, %v384_v0 }
  0xa2   :  { %v119_v5 = vadd.s32 %v118_v4, %v114_v3 }
  0xa4   :  { %v120_v7 = vadd.s32 536870912, %v119_v5 }
  0xa6   :  { %v121_v8 = vshrl.u32 %v120_v7, 30 }
  0xa8   :  { %v122_v9 = vshll.u32 %v121_v8, 30  ;;  %v145_v31 = vsub.s32 4, %v121_v8 }
  0xaa   :  { %v123_v10 = vsub.s32 %v119_v5, %v122_v9  ;;  %v146_v34 = vsel %vm61_vm10, %v145_v31, %v121_v8 }
  0xab   :  { %v148_v35 = vsel %vm60_vm11, 0, %v146_v34 }
  0xac   :  { %v125_v11 = vsub.s32 0, %v123_v10  ;;  %v152_v36 = vadd.s32 3, %v148_v35  ;;  %v256_v39 = vand.u32 3, %v148_v35 }
  0xae   :  { %v284_v12 = vmin.u32 %v125_v11, %v123_v10  ;;  %v153_v38 = vand.u32 3, %v152_v36  ;;  %vm261_vm14 = vcmp.eq.s32.totalorder %v256_v39, 2  ;;  %vm258_vm0 = vcmp.eq.s32.totalorder %v256_v39, 0 }
  0xaf   :  { %vm257_vm2 = vcmp.lt.s32.totalorder %v256_v39, 2 }
  0xb0   :  { %v127_v13 = vclz %v284_v12  ;;  %vm158_vm13 = vcmp.eq.s32.totalorder %v153_v38, 2  ;;  %vm155_vm15 = vcmp.eq.s32.totalorder %v153_v38, 0  ;;  %vm154_vm1 = vcmp.lt.s32.totalorder %v153_v38, 2 }
  0xb2   :  { %v285_v14 = vadd.s32 4294967294, %v127_v13 }
  0xb4   :  { %vm286_vm9 = vcmp.lt.s32.totalorder %v285_v14, 0 }
  0xb5   :  { %v130_v16 = vsel %vm286_vm9, 0, %v285_v14 }
  0xb6   :  { %v131_v18 = vsub.s32 32, %v130_v16  ;;  %v135_v19 = vsub.s32 4294967266, %v130_v16  ;;  %v132_v21 = vshll.u32 %v123_v10, %v130_v16 }
  0xb8   :  { %v133_v22 = vshrl.u32 %v115_v17, %v131_v18  ;;  %v136_v23 = vadd.s32 127, %v135_v19 }
  0xba   :  { %v134_v24 = vor.u32 %v133_v22, %v132_v21  ;;  %v137_v25 = vshll.u32 %v136_v23, 23 }
  0xbc   :  { %v138_v26 = vor.u32 4788187, %v137_v25  ;;  %v141_v28 = vcvt.s32.f32 %v134_v24 }
  0xbe   :  { %v139_v27 = vand.u32 2147483647, %v138_v26 }
  0xc0   :  { %v142_v29 = vmul.f32 %v141_v28, %v139_v27 }
  0xc2   :  { %v143_v30 = vxor.u32 2147483648, %v142_v29 }
  0xc4   :  { %v144_v32 = vsel %vm61_vm10, %v143_v30, %v142_v29 }
  0xc5   :  { %v147_v33 = vsel %vm60_vm11, %v374_v15, %v144_v32 }
  0xc6   :  { %311 = vcosq.f32 %v147_v33 }
  0xc7   :  { %313 = vsinq.f32 %v147_v33 }
  0xd3   :  { %v312_v40 = vpop.eup %311 }
  0xd4   :  { %v314_v41 = vpop.eup %313  ;;  %v159_v42 = vxor.u32 2147483648, %v312_v40 }
  0xd5   :  { %v156_v44 = vxor.u32 2147483648, %v314_v41 }
  0xd6   :  { %v160_v20 = vsel %vm158_vm13, %v159_v42, %v314_v41  ;;  %v263_v45 = vsel %vm261_vm14, %v159_v42, %v314_v41 }
  0xd7   :  { %v157_v6 = vsel %vm155_vm15, %v312_v40, %v156_v44  ;;  %v260_v46 = vsel %vm258_vm0, %v312_v40, %v156_v44 }
  0xd8   :  { %v161_v47 = vsel %vm154_vm1, %v157_v6, %v160_v20  ;;  %v264_v48 = vsel %vm257_vm2, %v260_v46, %v263_v45 }
  0xd9   :  { %v162_v49 = vsel %vm151_vm3, nan, %v161_v47  ;;  %v265_v50 = vsel %vm151_vm3, nan, %v264_v48 }
  0xda   :  { %v266_v51 = vsel %vm395_vm12, %v162_v49, %v265_v50 }
  0xdb   :  { %267 = vst [vmem:[#allocation2] sm:$0xff] %v266_v51 }
  0xdc   :  { %326 = shalt.err (!%p323_p4)
}
  0xdd   :  { %277 = dma.vmem_to_hbm [thread:$0]  %s275_s12, 128, %s407_s2, [#allocation3]  }
  0xde   :  { %335 = dma.done.wait [#allocation3], 128  }
  0xdf   :  { %336 = vsyncadd [#allocation3], 4294967168 }
  0xe0   :  { %281 = vsyncpa [#allocation3], 1 }

</bundles_post_ra>
